<compile_context>
chip_gen: v6e
topology: v6e:2x2x1
jax: 0.10.0
libtpu: 0.0.40
codegen_flags: <defaults>
</compile_context>

<pallas_src>
import jax
import jax.numpy as jnp
from jax import lax
from jax.experimental import pallas as pl
from jax.experimental.pallas import tpu as pltpu


# --------------------------------------------------------------------------
# VMEM limit (explicit, validated against hardware info when available)
# --------------------------------------------------------------------------
def _vmem_limit_bytes():
    try:
        cap = int(pltpu.get_tpu_info().vmem_capacity_bytes)
        return min(cap * 3 // 4, 96 * 1024 * 1024)
    except Exception:
        return 48 * 1024 * 1024


_VMEM_LIMIT = _vmem_limit_bytes()


def _pick_dst_tile(p, h, w, c, vmem_limit=_VMEM_LIMIT):
    """Destination-pixel tile TP and padded pixel count P_pad (multiple of TP).

    Budgets the per-tile live temporaries ((W,TP) one-hot/diff, (H,TP) row
    weights, (C*H,TP) matmul result) against the VMEM limit after the
    double-buffered bf16 source image.  If P exceeds the budget, TP is a
    128-multiple and P is padded up (padded pixels are discarded after the
    call), so stores stay lane-dense on every generation including v7x.
    """
    fixed = 2 * c * h * w * 2 + (2 << 20)              # bf16 image double-buffer + slack
    budget = max(vmem_limit - fixed, 8 << 20)
    per_p = 16 * w + 8 * h + 8 * c * h                 # rough live bytes per dst pixel
    tp_cap = max(128, min(2048, (budget // per_p) // 128 * 128))
    if p <= tp_cap:
        return p, p                                    # single tile, no padding needed
    n_tiles = -(-p // tp_cap)
    return tp_cap, n_tiles * tp_cap


# --------------------------------------------------------------------------
# plain-JAX glue: pose construction (generate_transformation)
# --------------------------------------------------------------------------
def _angle_axis_to_rotation_matrix(angle_axis):
    """(B, 3) angle-axis -> (B, 3, 3) rotation (Rodrigues, kornia-style)."""
    theta2 = jnp.sum(angle_axis * angle_axis, axis=-1)                 # (B,)
    theta = jnp.sqrt(jnp.maximum(theta2, 1e-12))
    k = angle_axis / theta[:, None]
    kx, ky, kz = k[:, 0], k[:, 1], k[:, 2]
    ct, st = jnp.cos(theta), jnp.sin(theta)
    oc = 1.0 - ct
    r_full = jnp.stack(
        [
            jnp.stack([ct + kx * kx * oc, kx * ky * oc - kz * st, kx * kz * oc + ky * st], -1),
            jnp.stack([ky * kx * oc + kz * st, ct + ky * ky * oc, ky * kz * oc - kx * st], -1),
            jnp.stack([kz * kx * oc - ky * st, kz * ky * oc + kx * st, ct + kz * kz * oc], -1),
        ],
        axis=-2,
    )
    wx, wy, wz = angle_axis[:, 0], angle_axis[:, 1], angle_axis[:, 2]
    one = jnp.ones_like(wx)
    r_small = jnp.stack(
        [
            jnp.stack([one, -wz, wy], -1),
            jnp.stack([wz, one, -wx], -1),
            jnp.stack([-wy, wx, one], -1),
        ],
        axis=-2,
    )
    use_full = (theta2 > 1e-6)[:, None, None]
    return jnp.where(use_full, r_full, r_small)


def generate_transformation(position, angle):
    """(B,3) translation + (B,3) angle-axis rotation -> (B,4,4) pose."""
    b = position.shape[0]
    rot = _angle_axis_to_rotation_matrix(angle.astype(jnp.float32))
    t = jnp.zeros((b, 4, 4), jnp.float32)
    t = t.at[:, :3, :3].set(rot)
    t = t.at[:, :3, 3].set(position.astype(jnp.float32))
    t = t.at[:, 3, 3].set(1.0)
    return t


# --------------------------------------------------------------------------
# plain-JAX glue: Gaussian window -> banded filter matrices
# --------------------------------------------------------------------------
def _gaussian_kernel_1d(window_size, sigma=1.5):
    x = jnp.arange(window_size, dtype=jnp.float32) - (window_size // 2)
    g = jnp.exp(-(x * x) / (2.0 * sigma * sigma))
    return g / jnp.sum(g)


def _band_matrix(n, g):
    """A[i, k] = g[k - i + R] if |k - i| <= R else 0 (zero-padded 'same' conv)."""
    r = g.shape[0] // 2
    idx = jnp.arange(n)
    diff = idx[None, :] - idx[:, None] + r
    valid = (diff >= 0) & (diff <= 2 * r)
    return jnp.where(valid, g[jnp.clip(diff, 0, 2 * r)], 0.0).astype(jnp.float32)


# --------------------------------------------------------------------------
# Pallas kernel 1: warp_frame_depth (unproject -> transform -> project ->
#   bilinear sample).  Grid over (batch, dst-pixel tile).  Bilinear grid_sample
#   (zeros padding, align_corners=True) is expressed as a separable one-hot
#   column matmul + row-weighted sublane reduce; the matmul operands are bf16
#   with f32 accumulation, all channels fused into one MXU call.
# --------------------------------------------------------------------------
def warp_frame_depth(image_src, depth_dst, src_trans_dst, camera_matrix):
    image_src = image_src.astype(jnp.float32)
    depth_dst = depth_dst.astype(jnp.float32)
    B, C, H, W = image_src.shape
    P = H * W
    TP, P_pad = _pick_dst_tile(P, H, W, C)
    NT = P_pad // TP

    cam = jnp.array(
        [camera_matrix[0, 0], camera_matrix[1, 1], camera_matrix[0, 2], camera_matrix[1, 2]],
        jnp.float32,
    )
    t_flat = src_trans_dst.reshape(B, 16).astype(jnp.float32)

    depth_flat = depth_dst.reshape(B, 1, P)
    # exact destination pixel coordinates (p = v*W + u, row-major), precomputed
    vv, uu = jnp.meshgrid(jnp.arange(H, dtype=jnp.float32),
                          jnp.arange(W, dtype=jnp.float32), indexing="ij")
    uv = jnp.stack([uu.reshape(-1), vv.reshape(-1)], axis=0)           # (2, P)
    if P_pad != P:
        uv = jnp.pad(uv, ((0, 0), (0, P_pad - P)))
        depth_flat = jnp.pad(depth_flat, ((0, 0), (0, 0), (0, P_pad - P)),
                             constant_values=1.0)

    # bf16 MXU operand (photometric data in [0,1]); halves image DMA + VMEM.
    image_bf16 = image_src.astype(jnp.bfloat16)

    def kernel(cam_ref, t_ref, uv_ref, img_ref, d_ref, out_ref):
        b = pl.program_id(0)
        fx, fy = cam_ref[0], cam_ref[1]
        cx, cy = cam_ref[2], cam_ref[3]

        uvv = uv_ref[...]                                              # (2, TP)
        u = uvv[0:1, :]                                                # (1, TP)
        v = uvv[1:2, :]
        d = d_ref[0]                                                   # (1, TP)

        # unproject (kornia.depth_to_3d, normalize_points=False)
        x = (u - cx) / fx * d
        y = (v - cy) / fy * d
        z = d

        # rigid transform (kornia.transform_points with 4x4 pose)
        def tm(i, j):
            return t_ref[b, 4 * i + j]

        xs = tm(0, 0) * x + tm(0, 1) * y + tm(0, 2) * z + tm(0, 3)
        ys = tm(1, 0) * x + tm(1, 1) * y + tm(1, 2) * z + tm(1, 3)
        zs = tm(2, 0) * x + tm(2, 1) * y + tm(2, 2) * z + tm(2, 3)
        ws = tm(3, 0) * x + tm(3, 1) * y + tm(3, 2) * z + tm(3, 3)
        w_inv = jnp.where(jnp.abs(ws) > 1e-8, 1.0 / ws, jnp.ones_like(ws))
        xs, ys, zs = xs * w_inv, ys * w_inv, zs * w_inv

        # project (kornia.project_points)
        z_inv = jnp.where(jnp.abs(zs) > 1e-8, 1.0 / zs, jnp.ones_like(zs))
        u_src = fx * (xs * z_inv) + cx
        v_src = fy * (ys * z_inv) + cy

        # bilinear grid_sample, zeros padding, align_corners=True
        # (normalize + unnormalize cancel -> sample at pixel coords directly)
        x0f = jnp.floor(u_src)
        y0f = jnp.floor(v_src)
        wx1 = u_src - x0f
        wx0 = 1.0 - wx1
        wy1 = v_src - y0f
        wy0 = 1.0 - wy1
        x0 = jnp.clip(x0f, -2.0, W + 1.0).astype(jnp.int32)
        y0 = jnp.clip(y0f, -2.0, H + 1.0).astype(jnp.int32)
        # zeros padding: OOB corner weights are zeroed BEFORE the one-hot build
        wx0 = jnp.where((x0 >= 0) & (x0 < W), wx0, 0.0)
        wx1 = jnp.where((x0 + 1 >= 0) & (x0 + 1 < W), wx1, 0.0)
        wy0 = jnp.where((y0 >= 0) & (y0 < H), wy0, 0.0)
        wy1 = jnp.where((y0 + 1 >= 0) & (y0 + 1 < H), wy1, 0.0)

        # separable one-hot bilinear weights: one diff tensor covers both
        # corners (x1 = x0+1, y1 = y0+1)
        diff_x = lax.broadcasted_iota(jnp.int32, (W, TP), 0) - x0      # (W, TP)
        diff_y = lax.broadcasted_iota(jnp.int32, (H, TP), 0) - y0      # (H, TP)
        col_w = jnp.where(diff_x == 0, wx0, jnp.where(diff_x == 1, wx1, 0.0))
        row_w = jnp.where(diff_y == 0, wy0, jnp.where(diff_y == 1, wy1, 0.0))

        # one fused bf16 (C*H, W) @ (W, TP) matmul for all channels, then a
        # per-pixel row-weighted sublane reduce
        img2d = img_ref[0].reshape(C * H, W)                           # bf16
        tmp = jnp.dot(img2d, col_w.astype(jnp.bfloat16),
                      preferred_element_type=jnp.float32)              # (C*H, TP)
        tmp = tmp.reshape(C, H, TP)
        res = jnp.sum(tmp * row_w[None, :, :], axis=1)                 # (C, TP)
        out_ref[0] = res.astype(out_ref.dtype)

    out = pl.pallas_call(
        kernel,
        out_shape=jax.ShapeDtypeStruct((B, C, P_pad), jnp.bfloat16),
        grid=(B, NT),
        in_specs=[
            pl.BlockSpec(memory_space=pltpu.MemorySpace.SMEM),         # camera intrinsics (4,)
            pl.BlockSpec(memory_space=pltpu.MemorySpace.SMEM),         # poses (B, 16)
            pl.BlockSpec((2, TP), lambda b, t: (0, t)),                # dst pixel coords
            pl.BlockSpec((1, C, H, W), lambda b, t: (b, 0, 0, 0)),     # full bf16 source image
            pl.BlockSpec((1, 1, TP), lambda b, t: (b, 0, t)),          # dst depth tile
        ],
        out_specs=pl.BlockSpec((1, C, TP), lambda b, t: (b, 0, t)),
        compiler_params=pltpu.CompilerParams(
            dimension_semantics=("parallel", "parallel"),
            vmem_limit_bytes=_VMEM_LIMIT),
    )(cam, t_flat, uv, image_bf16, depth_flat)
    return out[:, :, :P].reshape(B, C, H, W)


# --------------------------------------------------------------------------
# Pallas kernel 2: lambda_s * SSIM-loss + (1 - lambda_s) * L1.
#   Grid over (batch, channel); Gaussian 'same' conv expressed as banded bf16
#   matmuls (the five column-filter passes are batched into one (5H,W)@(W,W)
#   dot).  Each grid step writes its own lane-partial sums (no carried
#   accumulator -> both axes "parallel"); the tiny final reduce is plain JAX.
# --------------------------------------------------------------------------
def photometric_loss(img1, img2, lambda_s=0.85, window_size=11, max_val=1.0):
    B, C, H, W = img1.shape

    g = _gaussian_kernel_1d(window_size, 1.5)
    a_h = _band_matrix(H, g).astype(jnp.bfloat16)       # (H, H) row filter (MXU operand)
    a_w = _band_matrix(W, g).astype(jnp.bfloat16)       # (W, W) column filter (symmetric)
    c1 = (0.01 * max_val) ** 2
    c2 = (0.03 * max_val) ** 2
    lam = float(lambda_s)

    def kernel(ah_ref, aw_ref, x_ref, y_ref, out_ref):
        ah = ah_ref[...]                                # bf16 (H, H)
        aw = aw_ref[...]                                # bf16 (W, W)
        x = x_ref[0, 0].astype(jnp.float32)             # (H, W)
        y = y_ref[0, 0].astype(jnp.float32)

        # batch the column-filter stage for [x, y, x*x, y*y, x*y] into one dot
        stacked = jnp.concatenate([x, y, x * x, y * y, x * y], axis=0)   # (5H, W)
        stage1 = jnp.dot(stacked.astype(jnp.bfloat16), aw,
                         preferred_element_type=jnp.float32)              # (5H, W) f32

        def row_filt(i):  # row-filter stage of the separable Gaussian
            return jnp.dot(ah, stage1[i * H:(i + 1) * H, :].astype(jnp.bfloat16),
                           preferred_element_type=jnp.float32)

        mu1, mu2, ex2, ey2, exy = [row_filt(i) for i in range(5)]

        # variance / SSIM-ratio arithmetic stays in f32 (cancellation-sensitive)
        s11 = ex2 - mu1 * mu1
        s22 = ey2 - mu2 * mu2
        s12 = exy - mu1 * mu2
        num = (2.0 * mu1 * mu2 + c1) * (2.0 * s12 + c2)
        den = (mu1 * mu1 + mu2 * mu2 + c1) * (s11 + s22 + c2)
        ssim_l = jnp.clip((1.0 - num / den) * 0.5, 0.0, 1.0)
        # SSIM and L1 means are over the same element count -> fuse the maps
        fused = lam * ssim_l + (1.0 - lam) * jnp.abs(x - y)
        out_ref[0, 0] = jnp.sum(fused, axis=0, keepdims=True)             # (1, W)

    partial = pl.pallas_call(
        kernel,
        out_shape=jax.ShapeDtypeStruct((B, C, 1, W), jnp.float32),
        grid=(B, C),
        in_specs=[
            pl.BlockSpec((H, H), lambda b, c: (0, 0)),
            pl.BlockSpec((W, W), lambda b, c: (0, 0)),
            pl.BlockSpec((1, 1, H, W), lambda b, c: (b, c, 0, 0)),
            pl.BlockSpec((1, 1, H, W), lambda b, c: (b, c, 0, 0)),
        ],
        out_specs=pl.BlockSpec((1, 1, 1, W), lambda b, c: (b, c, 0, 0)),
        compiler_params=pltpu.CompilerParams(
            dimension_semantics=("parallel", "parallel"),
            vmem_limit_bytes=_VMEM_LIMIT),
    )(a_h, a_w, img1, img2)
    return jnp.sum(partial) / float(B * C * H * W)


# --------------------------------------------------------------------------
# Module-equivalent wrapper
# --------------------------------------------------------------------------
class TemporalPhotometricConsistencyLoss:
    def __init__(self, camera_matrix, right_camera_matrix, lambda_s=0.85,
                 window_size=11, reduction="mean", max_val=1.0):
        assert reduction == "mean"
        self.camera_matrix = camera_matrix
        self.right_camera_matrix = right_camera_matrix   # unused in forward (as in torch)
        self.lambda_s = lambda_s
        self.window_size = window_size
        self.max_val = max_val

    def calculate_loss(self, image1, image2):
        return photometric_loss(image1, image2, self.lambda_s,
                                self.window_size, self.max_val)

    def generate_next_image(self, current_image, next_depth, transformation_from_next_to_current):
        return warp_frame_depth(current_image, next_depth,
                                transformation_from_next_to_current, self.camera_matrix)

    def generate_current_image(self, next_image, current_depth, transformation_from_current_to_next):
        return warp_frame_depth(next_image, current_depth,
                                transformation_from_current_to_next, self.camera_matrix)

    def __call__(self, current_image, next_image, current_depth, next_depth,
                 current_position, current_angle, next_position, next_angle):
        t_next_to_current = generate_transformation(current_position, current_angle)
        t_current_to_next = generate_transformation(next_position, next_angle)
        generated_next_image = self.generate_next_image(current_image, next_depth, t_next_to_current)
        generated_current_image = self.generate_current_image(next_image, current_depth, t_current_to_next)
        next_loss = self.calculate_loss(generated_next_image, next_image)
        current_loss = self.calculate_loss(generated_current_image, current_image)
        return (next_loss + current_loss) / 2.0


# --------------------------------------------------------------------------
if __name__ == "__main__":
    B, C, H, W = 2, 3, 16, 16
    key = jax.random.PRNGKey(0)
    keys = jax.random.split(key, 8)

    current_image = jax.random.uniform(keys[0], (B, C, H, W), jnp.float32)
    next_image = jax.random.uniform(keys[1], (B, C, H, W), jnp.float32)
    current_depth = jax.random.uniform(keys[2], (B, 1, H, W), jnp.float32, 1.0, 4.0)
    next_depth = jax.random.uniform(keys[3], (B, 1, H, W), jnp.float32, 1.0, 4.0)
    current_position = 0.1 * jax.random.normal(keys[4], (B, 3), jnp.float32)
    current_angle = 0.05 * jax.random.normal(keys[5], (B, 3), jnp.float32)
    next_position = 0.1 * jax.random.normal(keys[6], (B, 3), jnp.float32)
    next_angle = 0.05 * jax.random.normal(keys[7], (B, 3), jnp.float32)

    fx = fy = float(W)
    cx, cy = (W - 1) / 2.0, (H - 1) / 2.0
    camera_matrix = jnp.array([[fx, 0.0, cx],
                               [0.0, fy, cy],
                               [0.0, 0.0, 1.0]], jnp.float32)
    right_camera_matrix = camera_matrix  # deterministic, unused in forward

    module = TemporalPhotometricConsistencyLoss(camera_matrix, right_camera_matrix)
    loss = module(current_image, next_image, current_depth, next_depth,
                  current_position, current_angle, next_position, next_angle)
    loss = jax.block_until_ready(loss)
    assert loss.shape == () and bool(jnp.isfinite(loss))
    print("KERNEL_OK")
</pallas_src>

<mosaic_0001>
module attributes {stable_mosaic.version = 11 : i64} {
  func.func @kernel(%arg0: i32, %arg1: i32, %arg2: memref<4xf32, #tpu.memory_space<smem>>, %arg3: memref<2x16xf32, #tpu.memory_space<smem>>, %arg4: memref<2x256xf32, #tpu.memory_space<vmem>>, %arg5: memref<1x3x16x16xbf16, #tpu.memory_space<vmem>>, %arg6: memref<1x1x256xf32, #tpu.memory_space<vmem>>, %arg7: memref<1x3x256xbf16, #tpu.memory_space<vmem>>) attributes {dimension_semantics = [#tpu.dimension_semantics<parallel>, #tpu.dimension_semantics<parallel>], iteration_bounds = array<i64: 2, 1>, scalar_prefetch = 0 : i64, scratch_operands = 0 : i64, tpu.core_type = #tpu.core_type<tc>, window_params = [{transform_indices = @transform_0, window_bounds = array<i64: 4>}, {transform_indices = @transform_1, window_bounds = array<i64: 2, 16>}, {transform_indices = @transform_2, window_bounds = array<i64: 2, 256>}, {transform_indices = @transform_3, window_bounds = array<i64: 1, 3, 16, 16>}, {transform_indices = @transform_4, window_bounds = array<i64: 1, 1, 256>}, {transform_indices = @transform_5, window_bounds = array<i64: 1, 3, 256>}]} {
    %c0 = arith.constant 0 : index
    %0 = memref.load %arg2[%c0] : memref<4xf32, #tpu.memory_space<smem>>
    %c1 = arith.constant 1 : index
    %1 = memref.load %arg2[%c1] : memref<4xf32, #tpu.memory_space<smem>>
    %c2 = arith.constant 2 : index
    %2 = memref.load %arg2[%c2] : memref<4xf32, #tpu.memory_space<smem>>
    %c3 = arith.constant 3 : index
    %3 = memref.load %arg2[%c3] : memref<4xf32, #tpu.memory_space<smem>>
    %c0_0 = arith.constant 0 : index
    %c0_1 = arith.constant 0 : index
    %4 = vector.load %arg4[%c0_0, %c0_1] : memref<2x256xf32, #tpu.memory_space<vmem>>, vector<2x256xf32>
    %5 = vector.extract_strided_slice %4 {offsets = [0, 0], sizes = [1, 256], strides = [1, 1]} : vector<2x256xf32> to vector<1x256xf32>
    %6 = vector.extract_strided_slice %4 {offsets = [1, 0], sizes = [1, 256], strides = [1, 1]} : vector<2x256xf32> to vector<1x256xf32>
    %c0_2 = arith.constant 0 : index
    %c0_3 = arith.constant 0 : index
    %c0_4 = arith.constant 0 : index
    %7 = vector.load %arg6[%c0_2, %c0_3, %c0_4] : memref<1x1x256xf32, #tpu.memory_space<vmem>>, vector<1x1x256xf32>
    %8 = vector.shape_cast %7 : vector<1x1x256xf32> to vector<1x256xf32>
    %9 = vector.broadcast %2 : f32 to vector<1x256xf32>
    %10 = arith.subf %5, %9 : vector<1x256xf32>
    %11 = vector.broadcast %0 : f32 to vector<1x256xf32>
    %12 = arith.divf %10, %11 : vector<1x256xf32>
    %13 = arith.mulf %12, %8 : vector<1x256xf32>
    %14 = vector.broadcast %3 : f32 to vector<1x256xf32>
    %15 = arith.subf %6, %14 : vector<1x256xf32>
    %16 = vector.broadcast %1 : f32 to vector<1x256xf32>
    %17 = arith.divf %15, %16 : vector<1x256xf32>
    %18 = arith.mulf %17, %8 : vector<1x256xf32>
    %19 = arith.index_cast %arg0 : i32 to index
    %c0_5 = arith.constant 0 : index
    %20 = memref.load %arg3[%19, %c0_5] : memref<2x16xf32, #tpu.memory_space<smem>>
    %21 = vector.broadcast %20 : f32 to vector<1x256xf32>
    %22 = arith.mulf %21, %13 : vector<1x256xf32>
    %23 = arith.index_cast %arg0 : i32 to index
    %c1_6 = arith.constant 1 : index
    %24 = memref.load %arg3[%23, %c1_6] : memref<2x16xf32, #tpu.memory_space<smem>>
    %25 = vector.broadcast %24 : f32 to vector<1x256xf32>
    %26 = arith.mulf %25, %18 : vector<1x256xf32>
    %27 = arith.addf %22, %26 : vector<1x256xf32>
    %28 = arith.index_cast %arg0 : i32 to index
    %c2_7 = arith.constant 2 : index
    %29 = memref.load %arg3[%28, %c2_7] : memref<2x16xf32, #tpu.memory_space<smem>>
    %30 = vector.broadcast %29 : f32 to vector<1x256xf32>
    %31 = arith.mulf %30, %8 : vector<1x256xf32>
    %32 = arith.addf %27, %31 : vector<1x256xf32>
    %33 = arith.index_cast %arg0 : i32 to index
    %c3_8 = arith.constant 3 : index
    %34 = memref.load %arg3[%33, %c3_8] : memref<2x16xf32, #tpu.memory_space<smem>>
    %35 = vector.broadcast %34 : f32 to vector<1x256xf32>
    %36 = arith.addf %32, %35 : vector<1x256xf32>
    %37 = arith.index_cast %arg0 : i32 to index
    %c4 = arith.constant 4 : index
    %38 = memref.load %arg3[%37, %c4] : memref<2x16xf32, #tpu.memory_space<smem>>
    %39 = vector.broadcast %38 : f32 to vector<1x256xf32>
    %40 = arith.mulf %39, %13 : vector<1x256xf32>
    %41 = arith.index_cast %arg0 : i32 to index
    %c5 = arith.constant 5 : index
    %42 = memref.load %arg3[%41, %c5] : memref<2x16xf32, #tpu.memory_space<smem>>
    %43 = vector.broadcast %42 : f32 to vector<1x256xf32>
    %44 = arith.mulf %43, %18 : vector<1x256xf32>
    %45 = arith.addf %40, %44 : vector<1x256xf32>
    %46 = arith.index_cast %arg0 : i32 to index
    %c6 = arith.constant 6 : index
    %47 = memref.load %arg3[%46, %c6] : memref<2x16xf32, #tpu.memory_space<smem>>
    %48 = vector.broadcast %47 : f32 to vector<1x256xf32>
    %49 = arith.mulf %48, %8 : vector<1x256xf32>
    %50 = arith.addf %45, %49 : vector<1x256xf32>
    %51 = arith.index_cast %arg0 : i32 to index
    %c7 = arith.constant 7 : index
    %52 = memref.load %arg3[%51, %c7] : memref<2x16xf32, #tpu.memory_space<smem>>
    %53 = vector.broadcast %52 : f32 to vector<1x256xf32>
    %54 = arith.addf %50, %53 : vector<1x256xf32>
    %55 = arith.index_cast %arg0 : i32 to index
    %c8 = arith.constant 8 : index
    %56 = memref.load %arg3[%55, %c8] : memref<2x16xf32, #tpu.memory_space<smem>>
    %57 = vector.broadcast %56 : f32 to vector<1x256xf32>
    %58 = arith.mulf %57, %13 : vector<1x256xf32>
    %59 = arith.index_cast %arg0 : i32 to index
    %c9 = arith.constant 9 : index
    %60 = memref.load %arg3[%59, %c9] : memref<2x16xf32, #tpu.memory_space<smem>>
    %61 = vector.broadcast %60 : f32 to vector<1x256xf32>
    %62 = arith.mulf %61, %18 : vector<1x256xf32>
    %63 = arith.addf %58, %62 : vector<1x256xf32>
    %64 = arith.index_cast %arg0 : i32 to index
    %c10 = arith.constant 10 : index
    %65 = memref.load %arg3[%64, %c10] : memref<2x16xf32, #tpu.memory_space<smem>>
    %66 = vector.broadcast %65 : f32 to vector<1x256xf32>
    %67 = arith.mulf %66, %8 : vector<1x256xf32>
    %68 = arith.addf %63, %67 : vector<1x256xf32>
    %69 = arith.index_cast %arg0 : i32 to index
    %c11 = arith.constant 11 : index
    %70 = memref.load %arg3[%69, %c11] : memref<2x16xf32, #tpu.memory_space<smem>>
    %71 = vector.broadcast %70 : f32 to vector<1x256xf32>
    %72 = arith.addf %68, %71 : vector<1x256xf32>
    %73 = arith.index_cast %arg0 : i32 to index
    %c12 = arith.constant 12 : index
    %74 = memref.load %arg3[%73, %c12] : memref<2x16xf32, #tpu.memory_space<smem>>
    %75 = vector.broadcast %74 : f32 to vector<1x256xf32>
    %76 = arith.mulf %75, %13 : vector<1x256xf32>
    %77 = arith.index_cast %arg0 : i32 to index
    %c13 = arith.constant 13 : index
    %78 = memref.load %arg3[%77, %c13] : memref<2x16xf32, #tpu.memory_space<smem>>
    %79 = vector.broadcast %78 : f32 to vector<1x256xf32>
    %80 = arith.mulf %79, %18 : vector<1x256xf32>
    %81 = arith.addf %76, %80 : vector<1x256xf32>
    %82 = arith.index_cast %arg0 : i32 to index
    %c14 = arith.constant 14 : index
    %83 = memref.load %arg3[%82, %c14] : memref<2x16xf32, #tpu.memory_space<smem>>
    %84 = vector.broadcast %83 : f32 to vector<1x256xf32>
    %85 = arith.mulf %84, %8 : vector<1x256xf32>
    %86 = arith.addf %81, %85 : vector<1x256xf32>
    %87 = arith.index_cast %arg0 : i32 to index
    %c15 = arith.constant 15 : index
    %88 = memref.load %arg3[%87, %c15] : memref<2x16xf32, #tpu.memory_space<smem>>
    %89 = vector.broadcast %88 : f32 to vector<1x256xf32>
    %90 = arith.addf %86, %89 : vector<1x256xf32>
    %91 = math.absf %90 : vector<1x256xf32>
    %cst = arith.constant 9.99999993E-9 : f32
    %92 = vector.broadcast %cst : f32 to vector<1x256xf32>
    %93 = arith.cmpf ogt, %91, %92 : vector<1x256xf32>
    %cst_9 = arith.constant 1.000000e+00 : f32
    %94 = vector.broadcast %cst_9 : f32 to vector<1x256xf32>
    %95 = arith.divf %94, %90 : vector<1x256xf32>
    %cst_10 = arith.constant 1.000000e+00 : f32
    %96 = vector.broadcast %cst_10 : f32 to vector<1x256xf32>
    %97 = arith.select %93, %95, %96 : vector<1x256xi1>, vector<1x256xf32>
    %98 = arith.mulf %36, %97 : vector<1x256xf32>
    %99 = arith.mulf %54, %97 : vector<1x256xf32>
    %100 = arith.mulf %72, %97 : vector<1x256xf32>
    %101 = math.absf %100 : vector<1x256xf32>
    %cst_11 = arith.constant 9.99999993E-9 : f32
    %102 = vector.broadcast %cst_11 : f32 to vector<1x256xf32>
    %103 = arith.cmpf ogt, %101, %102 : vector<1x256xf32>
    %cst_12 = arith.constant 1.000000e+00 : f32
    %104 = vector.broadcast %cst_12 : f32 to vector<1x256xf32>
    %105 = arith.divf %104, %100 : vector<1x256xf32>
    %cst_13 = arith.constant 1.000000e+00 : f32
    %106 = vector.broadcast %cst_13 : f32 to vector<1x256xf32>
    %107 = arith.select %103, %105, %106 : vector<1x256xi1>, vector<1x256xf32>
    %108 = arith.mulf %98, %107 : vector<1x256xf32>
    %109 = vector.broadcast %0 : f32 to vector<1x256xf32>
    %110 = arith.mulf %109, %108 : vector<1x256xf32>
    %111 = vector.broadcast %2 : f32 to vector<1x256xf32>
    %112 = arith.addf %110, %111 : vector<1x256xf32>
    %113 = arith.mulf %99, %107 : vector<1x256xf32>
    %114 = vector.broadcast %1 : f32 to vector<1x256xf32>
    %115 = arith.mulf %114, %113 : vector<1x256xf32>
    %116 = vector.broadcast %3 : f32 to vector<1x256xf32>
    %117 = arith.addf %115, %116 : vector<1x256xf32>
    %118 = math.floor %112 : vector<1x256xf32>
    %119 = math.floor %117 : vector<1x256xf32>
    %120 = arith.subf %112, %118 : vector<1x256xf32>
    %cst_14 = arith.constant 1.000000e+00 : f32
    %121 = vector.broadcast %cst_14 : f32 to vector<1x256xf32>
    %122 = arith.subf %121, %120 : vector<1x256xf32>
    %123 = arith.subf %117, %119 : vector<1x256xf32>
    %cst_15 = arith.constant 1.000000e+00 : f32
    %124 = vector.broadcast %cst_15 : f32 to vector<1x256xf32>
    %125 = arith.subf %124, %123 : vector<1x256xf32>
    %cst_16 = arith.constant -2.000000e+00 : f32
    %cst_17 = arith.constant 1.700000e+01 : f32
    %126 = vector.broadcast %cst_16 : f32 to vector<1x256xf32>
    %127 = arith.maximumf %126, %118 : vector<1x256xf32>
    %128 = vector.broadcast %cst_17 : f32 to vector<1x256xf32>
    %129 = arith.minimumf %128, %127 : vector<1x256xf32>
    %130 = arith.fptosi %129 : vector<1x256xf32> to vector<1x256xi32>
    %cst_18 = arith.constant -2.000000e+00 : f32
    %cst_19 = arith.constant 1.700000e+01 : f32
    %131 = vector.broadcast %cst_18 : f32 to vector<1x256xf32>
    %132 = arith.maximumf %131, %119 : vector<1x256xf32>
    %133 = vector.broadcast %cst_19 : f32 to vector<1x256xf32>
    %134 = arith.minimumf %133, %132 : vector<1x256xf32>
    %135 = arith.fptosi %134 : vector<1x256xf32> to vector<1x256xi32>
    %c0_i32 = arith.constant 0 : i32
    %136 = vector.broadcast %c0_i32 : i32 to vector<1x256xi32>
    %137 = arith.cmpi sge, %130, %136 : vector<1x256xi32>
    %c16_i32 = arith.constant 16 : i32
    %138 = vector.broadcast %c16_i32 : i32 to vector<1x256xi32>
    %139 = arith.cmpi slt, %130, %138 : vector<1x256xi32>
    %140 = arith.andi %137, %139 : vector<1x256xi1>
    %cst_20 = arith.constant 0.000000e+00 : f32
    %141 = vector.broadcast %cst_20 : f32 to vector<1x256xf32>
    %142 = arith.select %140, %122, %141 : vector<1x256xi1>, vector<1x256xf32>
    %c1_i32 = arith.constant 1 : i32
    %143 = vector.broadcast %c1_i32 : i32 to vector<1x256xi32>
    %144 = arith.addi %130, %143 : vector<1x256xi32>
    %c0_i32_21 = arith.constant 0 : i32
    %145 = vector.broadcast %c0_i32_21 : i32 to vector<1x256xi32>
    %146 = arith.cmpi sge, %144, %145 : vector<1x256xi32>
    %c1_i32_22 = arith.constant 1 : i32
    %147 = vector.broadcast %c1_i32_22 : i32 to vector<1x256xi32>
    %148 = arith.addi %130, %147 : vector<1x256xi32>
    %c16_i32_23 = arith.constant 16 : i32
    %149 = vector.broadcast %c16_i32_23 : i32 to vector<1x256xi32>
    %150 = arith.cmpi slt, %148, %149 : vector<1x256xi32>
    %151 = arith.andi %146, %150 : vector<1x256xi1>
    %cst_24 = arith.constant 0.000000e+00 : f32
    %152 = vector.broadcast %cst_24 : f32 to vector<1x256xf32>
    %153 = arith.select %151, %120, %152 : vector<1x256xi1>, vector<1x256xf32>
    %c0_i32_25 = arith.constant 0 : i32
    %154 = vector.broadcast %c0_i32_25 : i32 to vector<1x256xi32>
    %155 = arith.cmpi sge, %135, %154 : vector<1x256xi32>
    %c16_i32_26 = arith.constant 16 : i32
    %156 = vector.broadcast %c16_i32_26 : i32 to vector<1x256xi32>
    %157 = arith.cmpi slt, %135, %156 : vector<1x256xi32>
    %158 = arith.andi %155, %157 : vector<1x256xi1>
    %cst_27 = arith.constant 0.000000e+00 : f32
    %159 = vector.broadcast %cst_27 : f32 to vector<1x256xf32>
    %160 = arith.select %158, %125, %159 : vector<1x256xi1>, vector<1x256xf32>
    %c1_i32_28 = arith.constant 1 : i32
    %161 = vector.broadcast %c1_i32_28 : i32 to vector<1x256xi32>
    %162 = arith.addi %135, %161 : vector<1x256xi32>
    %c0_i32_29 = arith.constant 0 : i32
    %163 = vector.broadcast %c0_i32_29 : i32 to vector<1x256xi32>
    %164 = arith.cmpi sge, %162, %163 : vector<1x256xi32>
    %c1_i32_30 = arith.constant 1 : i32
    %165 = vector.broadcast %c1_i32_30 : i32 to vector<1x256xi32>
    %166 = arith.addi %135, %165 : vector<1x256xi32>
    %c16_i32_31 = arith.constant 16 : i32
    %167 = vector.broadcast %c16_i32_31 : i32 to vector<1x256xi32>
    %168 = arith.cmpi slt, %166, %167 : vector<1x256xi32>
    %169 = arith.andi %164, %168 : vector<1x256xi1>
    %cst_32 = arith.constant 0.000000e+00 : f32
    %170 = vector.broadcast %cst_32 : f32 to vector<1x256xf32>
    %171 = arith.select %169, %123, %170 : vector<1x256xi1>, vector<1x256xf32>
    %172 = tpu.iota {dimensions = array<i32: 0>} : vector<16x256xi32>
    %173 = vector.broadcast %130 : vector<1x256xi32> to vector<16x256xi32>
    %174 = arith.subi %172, %173 : vector<16x256xi32>
    %175 = tpu.iota {dimensions = array<i32: 0>} : vector<16x256xi32>
    %176 = vector.broadcast %135 : vector<1x256xi32> to vector<16x256xi32>
    %177 = arith.subi %175, %176 : vector<16x256xi32>
    %c0_i32_33 = arith.constant 0 : i32
    %178 = vector.broadcast %c0_i32_33 : i32 to vector<16x256xi32>
    %179 = arith.cmpi eq, %174, %178 : vector<16x256xi32>
    %c1_i32_34 = arith.constant 1 : i32
    %180 = vector.broadcast %c1_i32_34 : i32 to vector<16x256xi32>
    %181 = arith.cmpi eq, %174, %180 : vector<16x256xi32>
    %cst_35 = arith.constant 0.000000e+00 : f32
    %182 = vector.shape_cast %153 : vector<1x256xf32> to vector<1x256xf32>
    %183 = vector.broadcast %182 : vector<1x256xf32> to vector<16x256xf32>
    %184 = vector.broadcast %cst_35 : f32 to vector<16x256xf32>
    %185 = arith.select %181, %183, %184 : vector<16x256xi1>, vector<16x256xf32>
    %186 = vector.shape_cast %142 : vector<1x256xf32> to vector<1x256xf32>
    %187 = vector.broadcast %186 : vector<1x256xf32> to vector<16x256xf32>
    %188 = arith.select %179, %187, %185 : vector<16x256xi1>, vector<16x256xf32>
    %c0_i32_36 = arith.constant 0 : i32
    %189 = vector.broadcast %c0_i32_36 : i32 to vector<16x256xi32>
    %190 = arith.cmpi eq, %177, %189 : vector<16x256xi32>
    %c1_i32_37 = arith.constant 1 : i32
    %191 = vector.broadcast %c1_i32_37 : i32 to vector<16x256xi32>
    %192 = arith.cmpi eq, %177, %191 : vector<16x256xi32>
    %cst_38 = arith.constant 0.000000e+00 : f32
    %193 = vector.shape_cast %171 : vector<1x256xf32> to vector<1x256xf32>
    %194 = vector.broadcast %193 : vector<1x256xf32> to vector<16x256xf32>
    %195 = vector.broadcast %cst_38 : f32 to vector<16x256xf32>
    %196 = arith.select %192, %194, %195 : vector<16x256xi1>, vector<16x256xf32>
    %197 = vector.shape_cast %160 : vector<1x256xf32> to vector<1x256xf32>
    %198 = vector.broadcast %197 : vector<1x256xf32> to vector<16x256xf32>
    %199 = arith.select %190, %198, %196 : vector<16x256xi1>, vector<16x256xf32>
    %c0_39 = arith.constant 0 : index
    %c0_40 = arith.constant 0 : index
    %c0_41 = arith.constant 0 : index
    %c0_42 = arith.constant 0 : index
    %200 = vector.load %arg5[%c0_39, %c0_40, %c0_41, %c0_42] : memref<1x3x16x16xbf16, #tpu.memory_space<vmem>>, vector<1x3x16x16xbf16>
    %201 = vector.shape_cast %200 : vector<1x3x16x16xbf16> to vector<3x16x16xbf16>
    %202 = vector.shape_cast %201 : vector<3x16x16xbf16> to vector<48x16xbf16>
    %203 = arith.truncf %188 : vector<16x256xf32> to vector<16x256xbf16>
    %cst_43 = arith.constant dense<0.000000e+00> : vector<48x256xf32>
    %204 = tpu.matmul %202, %203, %cst_43 {dimension_numbers = #tpu.dot_dimension_numbers<[1], [0], [0], [1], [0, 0, 1, 1], [], []>} : vector<48x16xbf16>, vector<16x256xbf16>, vector<48x256xf32> -> vector<48x256xf32>
    %205 = vector.shape_cast %204 : vector<48x256xf32> to vector<3x16x256xf32>
    %206 = vector.shape_cast %199 : vector<16x256xf32> to vector<1x16x256xf32>
    %207 = vector.broadcast %206 : vector<1x16x256xf32> to vector<3x16x256xf32>
    %208 = arith.mulf %205, %207 : vector<3x16x256xf32>
    %cst_44 = arith.constant dense<0.000000e+00> : vector<3x256xf32>
    %209 = vector.multi_reduction <add>, %208, %cst_44 [1] : vector<3x16x256xf32> to vector<3x256xf32>
    %210 = arith.truncf %209 : vector<3x256xf32> to vector<3x256xbf16>
    %c0_45 = arith.constant 0 : index
    %c0_46 = arith.constant 0 : index
    %c0_47 = arith.constant 0 : index
    %211 = vector.load %arg7[%c0_45, %c0_46, %c0_47] : memref<1x3x256xbf16, #tpu.memory_space<vmem>>, vector<1x3x256xbf16>
    %212 = vector.shape_cast %211 : vector<1x3x256xbf16> to vector<3x256xbf16>
    %213 = vector.shape_cast %210 : vector<3x256xbf16> to vector<1x3x256xbf16>
    tpu.vector_store %arg7[%c0_45, %c0_46, %c0_47], %213 {strides = array<i32>} : memref<1x3x256xbf16, #tpu.memory_space<vmem>>, vector<1x3x256xbf16>,
    return
  }
  func.func @transform_0(%arg0: i32, %arg1: i32) -> i32 {
    %c0_i32 = arith.constant 0 : i32
    %c0_i32_0 = arith.constant 0 : i32
    return %c0_i32 : i32
  }
  func.func @transform_1(%arg0: i32, %arg1: i32) -> (i32, i32) {
    %c0_i32 = arith.constant 0 : i32
    %c0_i32_0 = arith.constant 0 : i32
    %c0_i32_1 = arith.constant 0 : i32
    return %c0_i32, %c0_i32_0 : i32, i32
  }
  func.func @transform_2(%arg0: i32, %arg1: i32) -> (i32, i32) {
    %c0_i32 = arith.constant 0 : i32
    %c0_i32_0 = arith.constant 0 : i32
    return %c0_i32, %arg1 : i32, i32
  }
  func.func @transform_3(%arg0: i32, %arg1: i32) -> (i32, i32, i32, i32) {
    %c0_i32 = arith.constant 0 : i32
    %c0_i32_0 = arith.constant 0 : i32
    %c0_i32_1 = arith.constant 0 : i32
    %c0_i32_2 = arith.constant 0 : i32
    return %arg0, %c0_i32, %c0_i32_0, %c0_i32_1 : i32, i32, i32, i32
  }
  func.func @transform_4(%arg0: i32, %arg1: i32) -> (i32, i32, i32) {
    %c0_i32 = arith.constant 0 : i32
    %c0_i32_0 = arith.constant 0 : i32
    return %arg0, %c0_i32, %arg1 : i32, i32, i32
  }
  func.func @transform_5(%arg0: i32, %arg1: i32) -> (i32, i32, i32) {
    %c0_i32 = arith.constant 0 : i32
    %c0_i32_0 = arith.constant 0 : i32
    return %arg0, %c0_i32, %arg1 : i32, i32, i32
  }
}

</mosaic_0001>

<bundles_post_ra>
// kernel: tpu_custom_call.1
= control target key start
LH: loop header
LB: loop body
LE: loop exit
PB: predicated region body
PF: predicated region fallthrough
CT: control target
= control target key end

     0   :  { %s1693_s0 = inlined_call_operand.hbm [shape: f32[4], index: 0, kind: input, shape index: {}]   ;;  %s1694_s1 = inlined_call_operand.hbm [shape: f32[2,16], index: 1, kind: input, shape index: {}]   ;;  %s1695_s2 = inlined_call_operand.hbm [shape: f32[2,256], index: 2, kind: input, shape index: {}]   ;;  %s1696_s3 = inlined_call_operand.hbm [shape: bf16[2,3,16,16], index: 3, kind: input, shape index: {}]   ;;  %s1697_s4 = inlined_call_operand.vmem [shape: f32[2,1,256], index: 4, kind: input, shape index: {}]   ;;  %s1698_s5 = inlined_call_operand.vmem [shape: bf16[2,3,256], index: 5, kind: output, shape index: {}]  }
   0x1   :  { %1699 = sst [smem:[#allocation14_spill]] %s1693_s0 }
   0x2   :  { %1700 = sst [smem:[#allocation15_spill]] %s1694_s1 }
   0x3   :  { %1701 = sst [smem:[#allocation16_spill]] %s1695_s2 }
   0x4   :  { %10 = vsyncpa [#allocation4], 0 }
   0x5   :  { %11 = vsyncpa [#allocation6], 0 }
   0x6   :  { %12 = vsyncpa [#allocation3], 0 }
   0x7   :  { %13 = vsyncpa [#allocation9], 0 }
   0x8   :  { %15 = vsyncpa [#allocation9 + $0x1], 0  ;;  %s1408_s18 = smov 0   ;;  %s1410_s19 = smov 0  }
   0x9   :  { %s1412_s20 = smov 0   ;;  %s1414_s21 = smov 0  }
   0xa   :  { %s1416_s22 = smov 0   ;;  %s1418_s23 = smov 0  }
   0xb LB: > { %s1083_s24 = sadd.s32 4294967295, %s1367_s23   ;;  %p121_p0 = scmp.ne.s32.totalorder %s1351_s19, %s1347_s18  ;;  %s1367_s23 = sphi %s1418_s23, %s21_s23   ;;  %s1363_s22 = sphi %s1416_s22, %s1714_s22   ;;  %s1359_s21 = sphi %s1414_s21, %s1713_s21   ;;  %s1355_s20 = sphi %s1412_s20, %s1712_s20   ;;  %s1351_s19 = sphi %s1410_s19, %s1711_s19   ;;  %s1347_s18 = sphi %s1408_s18, %s1710_s18  }
   0xc   : > { %p1438_p1 = scmp.eq.s32.totalorder %s1083_s24, 0  ;;  %p1085_p2 = scmp.ge.s32.totalorder %s1367_s23, 1 }
   0xd   : > { %p188_p3 = scmp.lt.s32.totalorder %s1367_s23, 3  ;;  %s1369_s28 = smov [#allocation7]  }
   0xe   : > { %p1446_p4 = por %p1438_p1, %p121_p0  ;;  %s222_s29 = sshll.u32 %s1369_s28, 4  ;;  %s223_s29 = int_to_ptr.vmem [resolvable:$true] %s222_s29 }
   0xf   : > { %p1450_p5 = pnand %p1085_p2, %p188_p3  ;;  %s33_s6 = sadd.s32 1, %s1363_s22 }
  0x10   : > { %s1370_s7 = smov [#allocation2]   ;;  %s1706_s0 = sld [smem:[#allocation14_spill]] }
  0x11   : > { %p1141_p6 = pneg %p1450_p5  ;;  %s1371_s10 = smov [#allocation5]  }
  0x12   : > { %s1707_s1 = sld [smem:[#allocation15_spill]]  ;;  %s1262_s13 = scalar_lea.vmem %s223_s29, 64 }
  0x13   : > { %p1458_p7 = pnand %p1141_p6, %p1438_p1  ;;  %p1263_p9 = scmp.ne.s32.totalorder %s223_s29, %s1262_s13 }
  0x14   : > { %p1270_p12 = scmp.lt.s32.totalorder %s223_s29, %s223_s29  ;;  %p1271_p13 = scmp.lt.s32.totalorder %s1262_s13, %s1262_s13 }
  0x15   : > { %p1253_p8 = pneg %p1458_p7 }
  0x16   : > { %1144 = dma.hbm_to_smem (!%p1458_p7), %s1706_s0, 16, %s1370_s7, [#allocation4]  }
  0x17   : > { %p1265_p10 = pnand %p1263_p9, %p1253_p8  ;;  %p1272_p0 = por %p1271_p13, %p1270_p12 }
  0x18   : > { %1147 = dma.hbm_to_smem (!%p1458_p7), %s1707_s1, 32, %s1371_s10, [#allocation6]  }
  0x19   : > { %p1266_p11 = pneg %p1265_p10 }
  0x1b   : > { %p1273_p2 = pnand %p1272_p0, %p1266_p11 }
  0x1d   : > { %1276 = shalt.err (!%p1273_p2)
}
  0x1e   : > { %s1708_s2 = sld [smem:[#allocation16_spill]]  ;;  %p35_p3 = scmp.ge.s32.totalorder %s33_s6, 2 }
  0x1f   : > { %s108_s16 = sadd.s32 1, %s1355_s20  ;;  %p115_p6 = scmp.ne.s32.totalorder %s1355_s20, %s1351_s19 }
  0x20   : > { %p116_p8 = scmp.eq.s32.totalorder %s1367_s23, 0  ;;  %s1716_s6 = smov (%p35_p3, %s33_s6), 0 }
  0x21   : > { %p1158_p10 = scmp.lt.s32.totalorder %s1367_s23, 2  ;;  %s105_s17 = ssub.s32 %s1363_s22, %s1716_s6 }
  0x22   : > { %p117_p9 = por %p116_p8, %p115_p6  ;;  %s233_s18 = sand.u32 1, %s1355_s20  }
  0x23   : > { %p106_p11 = scmp.eq.s32.totalorder %s105_s17, 0  ;;  %s1120_s24 = smul.u32 24, %s233_s18 }
  0x24   : > { %1150 = dma.hbm_to_vmem [thread:$0]  (!%p1458_p7), %s1708_s2, 64, %s223_s29, [#allocation3]  }
  0x25   : > { %p1490_p12 = pnand %p1158_p10, %p117_p9  ;;  %s1121_s29 = smul.u32 384, %s1363_s22 }
  0x26   : > { %s1495_s30 = scalar_select %p106_p11, %s1355_s20, %s108_s16  }
  0x27   : > { %s237_s7 = scalar_lea.vmem [#allocation8], %s1120_s24  ;;  %s243_s11 = scalar_lea.hbm %s1696_s3, %s1121_s29 }
  0x28   : > { %s244_s8 = sshll.u32 %s237_s7, 4  ;;  %s234_s12 = scalar_lea.sflag [#allocation9], %s233_s18  ;;  %s245_s8 = int_to_ptr.vmem [resolvable:$true] %s244_s8 }
  0x29   : > { %p1279_p7 = pneg %p1490_p12  ;;  %s1290_s13 = scalar_lea.vmem %s245_s8, 384 }
  0x2a   : > { %p1291_p13 = scmp.ne.s32.totalorder %s245_s8, %s1290_s13  ;;  %s1372_s14 = smov [#allocation8]  }
  0x2b   : > { %s1295_s15 = sshll.u32 %s1372_s14, 4  ;;  %s1296_s15 = int_to_ptr.vmem [resolvable:$false] %s1295_s15 }
  0x2c   : > { %p1293_p0 = pnand %p1291_p13, %p1279_p7  ;;  %s1297_s16 = scalar_lea.vmem %s1296_s15, 768 }
  0x2d   : > { %p1298_p3 = scmp.lt.s32.totalorder %s245_s8, %s1296_s15  ;;  %p1299_p6 = scmp.lt.s32.totalorder %s1297_s16, %s1290_s13 }
  0x2e   : > { %p1294_p2 = pneg %p1293_p0 }
  0x2f   : > { %p1300_p8 = por %p1299_p6, %p1298_p3 }
  0x31   : > { %p1301_p9 = pnand %p1300_p8, %p1294_p2 }
  0x33   : > { %1304 = shalt.err (!%p1301_p9)
}
  0x34   : > { %s1373_s17 = smov 64   ;;  %s1374_s24 = smov 4  }
  0x35   : > { %1154 = dma.hbm_to_vmem [thread:$0]  (!%p1490_p12), %s243_s11, 384, %s245_s8, %s234_s12, %s1373_s17, %s1373_s17, %s1374_s24  }
  0x36   : > { %268 = sbr.rel (%p1450_p5) target bundleno = 413 (0x19d), region = 40 }
  0x3b   : > { %1330 = dma.done.wait (%p1438_p1), [#allocation4], 16  }
  0x3c   : > { %1332 = vsyncadd (%p1438_p1), [#allocation4], 4294967280 }
  0x3d   : > { %1334 = dma.done.wait (%p1438_p1), [#allocation6], 32  }
  0x3e   : > { %1336 = vsyncadd (%p1438_p1), [#allocation6], 4294967264 }
  0x3f   : > { %1338 = dma.done.wait (%p1438_p1), [#allocation3], 64  }
  0x40   : > { %1340 = vsyncadd (%p1438_p1), [#allocation3], 4294967232  ;;  %s282_s27 = sand.u32 1, %s1351_s19  }
  0x41   : > { %s1122_s18 = smul.u32 24, %s282_s27  ;;  %s283_s28 = scalar_lea.sflag [#allocation9], %s282_s27 }
  0x43   : > { %s1520_s29 = scalar_lea.vmem [#allocation8], %s1122_s18 }
  0x44   : > { %1342 = dma.done.wait (%p1446_p4), %s283_s28, 384  }
  0x45   : > { %1344 = vsyncadd (%p1446_p4), %s283_s28, 4294966912 }
  0x46   : > { %291 = sfence }
  0x47   : > { %s1526_s7 = sld [smem:[#allocation2]]  ;;  %p328_p1 = scmp.lt.s32.totalorder %s1359_s21, 1  ;;  %v1375_v0 = vmov 0   ;;  %v1376_v3 = vmov 857870592   ;;  %v362_v5 = vlaneseq }
  0x48   : > { %s1529_s25 = sld [smem:[#allocation2 + $0x1]]  ;;  %763 = vmatprep.mubr.bf16.mxu0 %v1375_v0  ;;  %773 = vmatprep.mubr.bf16.mxu1 %v1375_v0  ;;  %v360_v4 = vunpack.c.l.s4 %v1376_v3  ;;  %s1548_s11 = sshll.u32 %s1359_s21, 7  ;;  %v351_v9 = vld [vmem:[#allocation7] sm:$0xf] }
  0x49   : > { %s1534_s26 = scalar_select %p328_p1, %s1359_s21, 1  ;;  %v1554_v7 = vshrl.u32 %v362_v5, 7 }
  0x4a   : > { %s1536_s8 = sld [smem:[#allocation2 + $0x2]]  ;;  %s405_s12 = sadd.s32 4, %s1548_s11  ;;  %v361_v6 = vunpack.c.0.s8 %v360_v4 }
  0x4b   : > { %s1539_s9 = sld [smem:[#allocation2 + $0x3]]  ;;  %s1095_s10 = sshll.u32 %s1534_s26, 1 }
  0x4c   : > { %s334_s15 = scalar_lea.vmem %s1697_s4, %s1095_s10  ;;  %s1556_s16 = sld [smem:[#allocation5 + %s405_s12]]  ;;  %v1568_v11 = vsub.s32 %v361_v6, %v1554_v7 }
  0x4d   : > { %v355_v1 = vstv %s1526_s7  ;;  %s467_s21 = sadd.s32 12, %s1548_s11  ;;  %s471_s24 = sadd.s32 13, %s1548_s11  ;;  %v1571_v12 = vld [vmem:[%s334_s15] sm:$0x3] }
  0x4e   : > { %1221 = vrcp.f32 %v355_v1  ;;  %v370_v2 = vstv %s1529_s25  ;;  %s1560_s17 = sld [smem:[#allocation5 + %s467_s21]]  ;;  %s480_s18 = sadd.s32 14, %s1548_s11  ;;  %v365_v16 = vrot.slane %v1571_v12, %v1568_v11 }
  0x4f   : > { %1223 = vrcp.f32 %v370_v2  ;;  %s1564_s27 = sld [smem:[#allocation5 + %s471_s24]]  ;;  %s436_s28 = sadd.s32 8, %s1548_s11 }
  0x50   : > { %v353_v8 = vstv %s1536_s8  ;;  %s481_s10 = sld [smem:[#allocation5 + %s480_s18]]  ;;  %s440_s12 = sadd.s32 9, %s1548_s11 }
  0x51   : > { %v368_v10 = vstv %s1539_s9  ;;  %v354_v13 = vsub.f32 %v351_v9, %v353_v8  ;;  %s409_s13 = sadd.s32 5, %s1548_s11  ;;  %s418_s21 = sadd.s32 6, %s1548_s11 }
  0x52   : > { %v369_v14 = vsub.f32 %v351_v9, %v368_v10  ;;  %s410_s14 = sld [smem:[#allocation5 + %s409_s13]]  ;;  %s449_s24 = sadd.s32 10, %s1548_s11  ;;  %v407_v20 = vstv %s1556_s16 }
  0x53   : > { %s419_s0 = sld [smem:[#allocation5 + %s418_s21]]  ;;  %s494_s18 = sadd.s32 15, %s1548_s11 }
  0x54   : > { %s1583_s15 = sld [smem:[#allocation5 + %s440_s12]]  ;;  %s432_s2 = sadd.s32 7, %s1548_s11  ;;  %v469_v23 = vstv %s1560_s17 }
  0x55   : > { %s1586_s1 = sld [smem:[#allocation5 + %s436_s28]]  ;;  %v473_v24 = vstv %s1564_s27  ;;  %s378_s16 = sadd.s32 1, %s1548_s11 }
  0x56   : > { %s1590_s13 = sld [smem:[#allocation5 + %s449_s24]]  ;;  %v482_v21 = vstv %s481_s10  ;;  %s387_s17 = sadd.s32 2, %s1548_s11 }
  0x57   : > { %s495_s21 = sld [smem:[#allocation5 + %s494_s18]]  ;;  %v483_v26 = vmul.f32 %v482_v21, %v1571_v12 }
  0x58   : > { %v411_v27 = vstv %s410_s14  ;;  %s433_s12 = sld [smem:[#allocation5 + %s432_s2]]  ;;  %s463_s2 = sadd.s32 11, %s1548_s11 }
  0x59   : > { %v420_v32 = vstv %s419_s0  ;;  %v491_v35 = vrot.slane %v483_v26, %v1568_v11  ;;  %s379_s0 = sld [smem:[#allocation5 + %s378_s16]] }
  0x5a   : > { %v442_v33 = vstv %s1583_s15  ;;  %v421_v36 = vmul.f32 %v420_v32, %v1571_v12  ;;  %s375_s27 = sld [smem:[#allocation5 + %s1548_s11]]  ;;  %v1621_v32 = vsub.s32 2, %v1554_v7 }
  0x5b   : > { %v1222_v15 = vpop.eup %1221  ;;  %v438_v43 = vstv %s1586_s1  ;;  %s464_s28 = sld [smem:[#allocation5 + %s463_s2]]  ;;  %s401_s1 = sadd.s32 3, %s1548_s11 }
  0x5c   : > { %v1224_v17 = vpop.eup %1223  ;;  %v357_v18 = vmul.f32 %v1222_v15, %v354_v13  ;;  %v429_v39 = vrot.slane %v421_v36, %v1568_v11  ;;  %v451_v44 = vstv %s1590_s13  ;;  %s388_s10 = sld [smem:[#allocation5 + %s387_s17]] }
  0x5d   : > { %v372_v19 = vmul.f32 %v1224_v17, %v369_v14  ;;  %v496_v41 = vstv %s495_s21  ;;  %v452_v51 = vmul.f32 %v451_v44, %v1571_v12  ;;  %s402_s14 = sld [smem:[#allocation5 + %s401_s1]] }
  0x5e   : > { %v367_v22 = vmul.f32 %v365_v16, %v357_v18  ;;  %v434_v46 = vstv %s433_s12 }
  0x5f   : > { %v373_v25 = vmul.f32 %v372_v19, %v365_v16  ;;  %v460_v54 = vrot.slane %v452_v51, %v1568_v11  ;;  %v380_v55 = vstv %s379_s0 }
  0x60   : > { %v408_v28 = vmul.f32 %v407_v20, %v367_v22  ;;  %v470_v29 = vmul.f32 %v469_v23, %v367_v22  ;;  %v439_v49 = vmul.f32 %v438_v43, %v367_v22  ;;  %v376_v60 = vstv %s375_s27 }
  0x61   : > { %v474_v30 = vmul.f32 %v473_v24, %v373_v25  ;;  %v412_v31 = vmul.f32 %v411_v27, %v373_v25  ;;  %v443_v40 = vmul.f32 %v442_v33, %v373_v25  ;;  %v381_v58 = vmul.f32 %v380_v55, %v373_v25 }
  0x62   : > { %v465_v59 = vstv %s464_s28  ;;  %v389_v61 = vstv %s388_s10  ;;  %v377_v63 = vmul.f32 %v376_v60, %v367_v22  ;;  %v1624_v33 = vsub.s32 0, %v1554_v7 }
  0x63   : > { %v1105_v34 = vrot.slane %v474_v30, 9  ;;  %v1103_v37 = vrot.slane %v412_v31, 9  ;;  %v1104_v50 = vrot.slane %v443_v40, 9  ;;  %v1102_v3 = vrot.slane %v381_v58, 9 }
  0x64   : > { %v390_v4 = vmul.f32 %v389_v61, %v1571_v12  ;;  %v403_v17 = vstv %s402_s14 }
  0x65   : > { %v479_v38 = vadd.f32 %v1105_v34, %v470_v29  ;;  %v417_v42 = vadd.f32 %v1103_v37, %v408_v28  ;;  %v448_v53 = vadd.f32 %v1104_v50, %v439_v49  ;;  %v386_v14 = vadd.f32 %v1102_v3, %v377_v63  ;;  %v1219_v63 = vld [vmem:[%s1520_s29 + $0x8] sm:$0xff]   ;;  %v1220_v3 = vld [vmem:[%s1520_s29 + $0x10] sm:$0xff]  }
  0x66   : > { %v398_v15 = vrot.slane %v390_v4, %v1568_v11 }
  0x67   : > { %v493_v45 = vadd.f32 %v491_v35, %v479_v38  ;;  %v431_v47 = vadd.f32 %v429_v39, %v417_v42  ;;  %v462_v56 = vadd.f32 %v460_v54, %v448_v53 }
  0x68   : > { %v400_v16 = vadd.f32 %v398_v15, %v386_v14 }
  0x69   : > { %v497_v48 = vadd.f32 %v496_v41, %v493_v45  ;;  %v435_v52 = vadd.f32 %v434_v46, %v431_v47  ;;  %v466_v62 = vadd.f32 %v465_v59, %v462_v56 }
  0x6a   : > { %v404_v18 = vadd.f32 %v403_v17, %v400_v16 }
  0x6b   : > { %1225 = vrcp.f32 %v497_v48  ;;  %v498_v57 = vand.u32 2147483647, %v497_v48 }
  0x6d   : > { %vm499_vm0 = vcmp.gt.f32.partialorder %v498_v57, 1e-08 }
  0x78   : > { %v1226_v5 = vpop.eup %1225 }
  0x79   : > { %v502_v6 = vsel %vm499_vm0, %v1226_v5, 1.0  ;;  %vm721_vm0 = vcmask 130048  }
  0x7a   : > { %v505_v9 = vmul.f32 %v502_v6, %v466_v62  ;;  %v504_v13 = vmul.f32 %v502_v6, %v435_v52  ;;  %v503_v20 = vmul.f32 %v502_v6, %v404_v18  ;;  %v1218_v62 = vld [vmem:[%s1520_s29] sm:$0xff]   ;;  %s1117_s29 = sshll.u32 %s1534_s26, 2 }
  0x7b   : > { %s344_s8 = scalar_lea.vmem %s1698_s5, %s1117_s29 }
  0x7c   : > { %1227 = vrcp.f32 %v505_v9  ;;  %v506_v19 = vand.u32 2147483647, %v505_v9 }
  0x7e   : > { %vm507_vm1 = vcmp.gt.f32.partialorder %v506_v19, 1e-08 }
  0x89   : > { %v1228_v12 = vpop.eup %1227 }
  0x8a   : > { %v510_v21 = vsel %vm507_vm1, %v1228_v12, 1.0 }
  0x8b   : > { %v511_v22 = vmul.f32 %v510_v21, %v503_v20  ;;  %v514_v23 = vmul.f32 %v510_v21, %v504_v13 }
  0x8d   : > { %v512_v24 = vmul.f32 %v511_v22, %v355_v1  ;;  %v515_v25 = vmul.f32 %v514_v23, %v370_v2  ;;  %v1627_v2 = vadd.s32 8, %v1554_v7 }
  0x8f   : > { %v513_v26 = vadd.f32 %v512_v24, %v353_v8  ;;  %v1618_v27 = vadd.f32 %v515_v25, %v368_v10 }
  0x91   : > { %v517_v11 = vfloor.f32 %v513_v26  ;;  %v518_v4 = vfloor.f32 %v1618_v27 }
  0x93   : > { %v523_v28 = vmax.f32 %v517_v11, -2.0  ;;  %v519_v29 = vsub.f32 %v513_v26, %v517_v11  ;;  %v526_v5 = vmax.f32 %v518_v4, -2.0  ;;  %v521_v15 = vsub.f32 %v1618_v27, %v518_v4 }
  0x95   : > { %v524_v30 = vmin.f32 %v523_v28, 17.0  ;;  %v520_v34 = vsub.f32 1.0, %v519_v29  ;;  %v527_v6 = vmin.f32 %v526_v5, 17.0  ;;  %v522_v17 = vsub.f32 1.0, %v521_v15 }
  0x97   : > { %v1123_v31 = vtrunc.f32 %v524_v30  ;;  %v1125_v9 = vtrunc.f32 %v527_v6 }
  0x99   : > { %v1124_v1 = vcvt.f32.s32 %v1123_v31  ;;  %v1126_v13 = vcvt.f32.s32 %v1125_v9 }
  0x9b   : > { %vm529_vm2 = vcmp.ge.s32.totalorder %v1124_v1, 0  ;;  %vm530_vm3 = vcmp.lt.s32.totalorder %v1124_v1, 16  ;;  %v533_v8 = vadd.s32 1, %v1124_v1  ;;  %v557_v10 = vrot.slane %v1124_v1, %v1621_v32 }
  0x9c   : > { %vm531_vm4 = vmand %vm529_vm2, %vm530_vm3  ;;  %v553_v35 = vrot.slane %v1124_v1, %v1624_v33  ;;  %v542_v14 = vadd.s32 1, %v1126_v13  ;;  %v573_v16 = vrot.slane %v1126_v13, %v1624_v33  ;;  %vm538_vm3 = vcmp.ge.s32.totalorder %v1126_v13, 0 }
  0x9d   : > { %v532_v36 = vsel %vm531_vm4, %v520_v34, 0.0  ;;  %vm534_vm5 = vcmp.ge.s32.totalorder %v533_v8, 0  ;;  %vm535_vm6 = vcmp.lt.s32.totalorder %v533_v8, 16  ;;  %v565_v37 = vrot.slane %v557_v10, %v1624_v33 }
  0x9e   : > { %vm536_vm7 = vmand %vm534_vm5, %vm535_vm6  ;;  %v629_v38 = vrot.slane %v532_v36, %v1621_v32  ;;  %v561_v39 = vrot.slane %v553_v35, %v1624_v33  ;;  %v625_v46 = vrot.slane %v532_v36, %v1624_v33  ;;  %vm543_vm1 = vcmp.ge.s32.totalorder %v542_v14, 0 }
  0x9f   : > { %v537_v40 = vsel %vm536_vm7, %v519_v29, 0.0  ;;  %v567_v41 = vsub.s32 %v1554_v7, %v565_v37  ;;  %v569_v42 = vsub.s32 %v1627_v2, %v565_v37  ;;  %vm544_vm2 = vcmp.lt.s32.totalorder %v542_v14, 16 }
  0xa0   : > { %v606_v43 = vrot.slane %v537_v40, %v1621_v32  ;;  %v566_v44 = vsub.s32 %v1554_v7, %v561_v39  ;;  %v568_v45 = vsub.s32 %v1627_v2, %v561_v39  ;;  %v639_v47 = vrot.slane %v629_v38, %v1624_v33  ;;  %vm545_vm5 = vmand %vm543_vm1, %vm544_vm2 }
  0xa1   : > { %vm595_vm8 = vcmp.eq.s32.totalorder %v567_v41, 1  ;;  %vm597_vm9 = vcmp.eq.s32.totalorder %v569_v42, 1  ;;  %vm591_vm10 = vcmp.eq.s32.totalorder %v567_v41, 0  ;;  %vm593_vm11 = vcmp.eq.s32.totalorder %v569_v42, 0 }
  0xa2   : > { %v616_v48 = vrot.slane %v606_v43, %v1624_v33  ;;  %vm590_vm12 = vcmp.eq.s32.totalorder %v566_v44, 0  ;;  %vm594_vm13 = vcmp.eq.s32.totalorder %v566_v44, 1  ;;  %v602_v49 = vrot.slane %v537_v40, %v1624_v33 }
  0xa3   : > { %vm596_vm14 = vcmp.eq.s32.totalorder %v568_v45, 1  ;;  %v635_v52 = vrot.slane %v625_v46, %v1624_v33  ;;  %vm592_vm15 = vcmp.eq.s32.totalorder %v568_v45, 0  ;;  %vm539_vm4 = vcmp.lt.s32.totalorder %v1126_v13, 16 }
  0xa4   : > { %v618_v50 = vsel %vm595_vm8, %v616_v48, 0.0  ;;  %v620_v51 = vsel %vm597_vm9, %v616_v48, 0.0  ;;  %v612_v55 = vrot.slane %v602_v49, %v1624_v33  ;;  %vm540_vm6 = vmand %vm538_vm3, %vm539_vm4  ;;  %v546_v18 = vsel %vm545_vm5, %v521_v15, 0.0 }
  0xa5   : > { %v641_v53 = vsel %vm591_vm10, %v639_v47, %v618_v50  ;;  %v643_v54 = vsel %vm593_vm11, %v639_v47, %v620_v51  ;;  %v581_v19 = vrot.slane %v573_v16, %v1624_v33  ;;  %v541_v12 = vsel %vm540_vm6, %v522_v17, 0.0 }
  0xa6   : > { %v705_v56 = vpack.c.bf16 %v643_v54, %v641_v53  ;;  %v617_v57 = vsel %vm594_vm13, %v612_v55, 0.0  ;;  %v619_v58 = vsel %vm596_vm14, %v612_v55, 0.0  ;;  %v656_v21 = vrot.slane %v546_v18, %v1624_v33 }
  0xa7   : > { %v640_v59 = vsel %vm590_vm12, %v635_v52, %v617_v57  ;;  %v642_v60 = vsel %vm592_vm15, %v635_v52, %v619_v58  ;;  %v586_v22 = vsub.s32 %v1554_v7, %v581_v19  ;;  %v660_v23 = vrot.slane %v546_v18, %v1621_v32 }
  0xa8   : > { %745 = vmatprep.subr.bf16.mxu0 %v705_v56  ;;  %1118 = vmatprep.subr.bf16.mxu1 %v705_v56  ;;  %v704_v61 = vpack.c.bf16 %v642_v60, %v640_v59  ;;  %v588_v24 = vsub.s32 %v1627_v2, %v581_v19  ;;  %v679_v26 = vrot.slane %v541_v12, %v1624_v33  ;;  %vm912_vm15 = vcmask 1041409  }
  0xa9   : > { %v666_v11 = vrot.slane %v656_v21, %v1624_v33  ;;  %v683_v28 = vrot.slane %v541_v12, %v1621_v32  ;;  %vm648_vm7 = vcmp.eq.s32.totalorder %v586_v22, 1  ;;  %v670_v29 = vrot.slane %v660_v23, %v1624_v33 }
  0xaa   : > { %746 = vmatpush1.bf16.msra.mxu0 %v704_v61  ;;  %1119 = vmatpush1.bf16.msra.mxu1 %v704_v61  ;;  %vm650_vm8 = vcmp.eq.s32.totalorder %v588_v24, 1  ;;  %vm644_vm10 = vcmp.eq.s32.totalorder %v586_v22, 0  ;;  %v689_v30 = vrot.slane %v679_v26, %v1624_v33  ;;  %vm646_vm12 = vcmp.eq.s32.totalorder %v588_v24, 0 }
  0xab   : > { %v671_v31 = vsel %vm648_vm7, %v666_v11, 0.0  ;;  %v693_v34 = vrot.slane %v683_v28, %v1624_v33  ;;  %v673_v1 = vsel %vm650_vm8, %v666_v11, 0.0  ;;  %vm931_vm1 = vsmask.f32 1280 }
  0xac   : > { %v694_v35 = vsel %vm644_vm10, %v689_v30, %v671_v31  ;;  %v696_v38 = vsel %vm646_vm12, %v689_v30, %v673_v1  ;;  %vm933_vm2 = vcmask 1043458   ;;  %vm934_vm3 = vsmask.f32 3328 }
  0xad   : > { %1109 = vmatmul.mubr.msk.bf16.vlgmr.msra.gmra.mxu0 %vm721_vm0, %v1218_v62  ;;  %1110 = vmatmul.mubr.msk.bf16.vlgmr.msra.gmra.mxu1 %vm721_vm0, %v1219_v63  ;;  %vm915_vm4 = vcmask 1042434   ;;  %vm935_vm6 = vmand %vm933_vm2, %vm934_vm3 }
  0xae   : > { %783 = vmatprep.mubr.bf16.mxu1 %v1375_v0  ;;  %v577_v0 = vrot.slane %v1126_v13, %v1621_v32 }
  0xb0   : > { %v585_v20 = vrot.slane %v577_v0, %v1624_v33 }
  0xb2   : > { %v587_v25 = vsub.s32 %v1554_v7, %v585_v20  ;;  %v589_v27 = vsub.s32 %v1627_v2, %v585_v20 }
  0xb4   : > { %vm649_vm9 = vcmp.eq.s32.totalorder %v587_v25, 1  ;;  %vm651_vm11 = vcmp.eq.s32.totalorder %v589_v27, 1  ;;  %vm645_vm13 = vcmp.eq.s32.totalorder %v587_v25, 0  ;;  %vm647_vm14 = vcmp.eq.s32.totalorder %v589_v27, 0 }
  0xb5   : > { %1111 = vmatmul.mubr.msk.bf16.gmra.mxu1 %vm721_vm0, %v1220_v3  ;;  %v672_v10 = vsel %vm649_vm9, %v670_v29, 0.0  ;;  %v674_v32 = vsel %vm651_vm11, %v670_v29, 0.0  ;;  %v1377_v3 = vmov 1983009808   ;;  %vm930_vm0 = vcmask 1041408  }
  0xb6   : > { %v695_v40 = vsel %vm645_vm13, %v693_v34, %v672_v10  ;;  %v697_v43 = vsel %vm647_vm14, %v693_v34, %v674_v32  ;;  %v862_v4 = vunpack.c.l.s4 %v1377_v3  ;;  %vm932_vm5 = vmand %vm930_vm0, %vm931_vm1 }
  0xb7   : > { %vm936_vm7 = vmor %vm935_vm6, %vm932_vm5 }
  0xb8   : > { %v863_v20 = vunpack.c.0.s8 %v862_v4 }
 0x16d   : > { %v765_v8 = vpop.f32.mrf.mxu0  ;;  %v775_v2 = vpop.f32.mrf.mxu1 }
 0x16e   : > { %v794_v39 = vmul.f32 %v765_v8, %v694_v35  ;;  %v798_v44 = vmul.f32 %v775_v2, %v694_v35  ;;  %v866_v8 = vsub.s32 %v863_v20, %v1554_v7 }
 0x16f   : > { %v767_v36 = vpop.f32.mrf.mxu0  ;;  %v777_v37 = vpop.f32.mrf.mxu1 }
 0x170   : > { %v795_v45 = vmul.f32 %v767_v36, %v695_v40  ;;  %v799_v47 = vmul.f32 %v777_v37, %v695_v40 }
 0x171   : > { %v769_v41 = vpop.f32.mrf.mxu0  ;;  %v779_v42 = vpop.f32.mrf.mxu1 }
 0x172   : > { %v796_v33 = vmul.f32 %v769_v41, %v696_v38  ;;  %v800_v46 = vmul.f32 %v779_v42, %v696_v38 }
 0x173   : > { %v771_v48 = vpop.f32.mrf.mxu0  ;;  %v781_v49 = vpop.f32.mrf.mxu1 }
 0x174   : > { %v806_v50 = vadd.f32 %v796_v33, %v794_v39  ;;  %v820_v51 = vadd.f32 %v800_v46, %v798_v44  ;;  %v797_v52 = vmul.f32 %v771_v48, %v697_v43  ;;  %v801_v53 = vmul.f32 %v781_v49, %v697_v43 }
 0x175   : > { %v785_v54 = vpop.f32.mrf.mxu1 }
 0x176   : > { %v807_v55 = vrot.slane %v806_v50, 4  ;;  %v821_v56 = vrot.slane %v820_v51, 4  ;;  %v813_v57 = vadd.f32 %v797_v52, %v795_v45  ;;  %v827_v58 = vadd.f32 %v801_v53, %v799_v47 }
 0x177   : > { %v787_v59 = vpop.f32.mrf.mxu1  ;;  %v802_v15 = vmul.f32 %v785_v54, %v694_v35 }
 0x178   : > { %v808_v60 = vadd.f32 %v807_v55, %v806_v50  ;;  %v822_v61 = vadd.f32 %v821_v56, %v820_v51  ;;  %v814_v62 = vrot.slane %v813_v57, 4  ;;  %v828_v63 = vrot.slane %v827_v58, 4 }
 0x179   : > { %v789_v5 = vpop.f32.mrf.mxu1  ;;  %v803_v12 = vmul.f32 %v787_v59, %v695_v40 }
 0x17a   : > { %v809_v6 = vrot.slane %v808_v60, 2  ;;  %v823_v9 = vrot.slane %v822_v61, 2  ;;  %v815_v13 = vadd.f32 %v814_v62, %v813_v57  ;;  %v829_v14 = vadd.f32 %v828_v63, %v827_v58 }
 0x17b   : > { %v804_v16 = vmul.f32 %v789_v5, %v696_v38  ;;  %v791_v0 = vpop.f32.mrf.mxu1  ;;  %v937_v5 = vld [vmem:[%s344_s8] sm:$0xf] }
 0x17c   : > { %v824_v17 = vadd.f32 %v823_v9, %v822_v61  ;;  %v816_v18 = vrot.slane %v815_v13, 2  ;;  %v830_v19 = vrot.slane %v829_v14, 2  ;;  %v805_v22 = vmul.f32 %v791_v0, %v697_v43 }
 0x17d   : > { %v834_v21 = vadd.f32 %v804_v16, %v802_v15  ;;  %v810_v23 = vadd.f32 %v809_v6, %v808_v60 }
 0x17e   : > { %v825_v24 = vrot.slane %v824_v17, 1  ;;  %v817_v25 = vadd.f32 %v816_v18, %v815_v13  ;;  %v831_v26 = vadd.f32 %v830_v19, %v829_v14  ;;  %v841_v11 = vadd.f32 %v805_v22, %v803_v12 }
 0x17f   : > { %v835_v27 = vrot.slane %v834_v21, 4  ;;  %v811_v34 = vrot.slane %v810_v23, 1 }
 0x180   : > { %v818_v28 = vrot.slane %v817_v25, 1  ;;  %v832_v29 = vrot.slane %v831_v26, 1  ;;  %v842_v31 = vrot.slane %v841_v11, 4  ;;  %v826_v1 = vadd.f32 %v825_v24, %v824_v17 }
 0x181   : > { %v836_v30 = vadd.f32 %v835_v27, %v834_v21  ;;  %v812_v39 = vadd.f32 %v811_v34, %v810_v23 }
 0x182   : > { %v833_v2 = vadd.f32 %v832_v29, %v831_v26  ;;  %v843_v32 = vadd.f32 %v842_v31, %v841_v11  ;;  %v819_v35 = vadd.f32 %v818_v28, %v817_v25 }
 0x183   : > { %v837_v10 = vrot.slane %v836_v30, 2 }
 0x184   : > { %v1113_v36 = vpack.c.bf16 %v833_v2, %v826_v1  ;;  %v844_v38 = vrot.slane %v843_v32, 2  ;;  %v1112_v43 = vpack.c.bf16 %v819_v35, %v812_v39 }
 0x185   : > { %v838_v37 = vadd.f32 %v837_v10, %v836_v30 }
 0x186   : > { %v875_v40 = vrot.slane %v1113_v36, %v866_v8  ;;  %v845_v42 = vadd.f32 %v844_v38, %v843_v32  ;;  %v867_v47 = vrot.slane %v1112_v43, %v866_v8 }
 0x187   : > { %v839_v41 = vrot.slane %v838_v37, 1 }
 0x188   : > { %v846_v44 = vrot.slane %v845_v42, 1  ;;  %v897_v45 = vrot.slane %v875_v40, %v866_v8  ;;  %v890_v51 = vrot.slane %v867_v47, %v866_v8 }
 0x189   : > { %v840_v33 = vadd.f32 %v839_v41, %v838_v37 }
 0x18a   : > { %v847_v46 = vadd.f32 %v846_v44, %v845_v42  ;;  %v907_v7 = vunpack.c.l.b16 %v897_v45  ;;  %v908_v49 = vunpack.c.h.b16 %v897_v45  ;;  %v905_v57 = vunpack.c.l.b16 %v890_v51 }
 0x18b   : > { %v906_v58 = vunpack.c.h.b16 %v890_v51 }
 0x18c   : > { %v1114_v48 = vpack.c.bf16 %v847_v46, %v840_v33  ;;  %v911_v53 = vrot.slane %v907_v7, 7  ;;  %v917_v54 = vrot.slane %v908_v49, 7 }
 0x18e   : > { %v883_v50 = vrot.slane %v1114_v48, %v866_v8  ;;  %v913_v61 = vsel %vm912_vm15, %v911_v53, %v905_v57  ;;  %v918_v62 = vsel %vm912_vm15, %v917_v54, %v906_v58 }
 0x190   : > { %v904_v52 = vrot.slane %v883_v50, %v866_v8 }
 0x192   : > { %v909_v55 = vunpack.c.l.b16 %v904_v52  ;;  %v910_v56 = vunpack.c.h.b16 %v904_v52 }
 0x194   : > { %v914_v59 = vrot.slane %v909_v55, 6  ;;  %v919_v60 = vrot.slane %v910_v56, 6 }
 0x196   : > { %v916_v63 = vsel %vm915_vm4, %v914_v59, %v913_v61  ;;  %v920_v3 = vsel %vm915_vm4, %v919_v60, %v918_v62 }
 0x197   : > { %v921_v4 = vpack.c.b16 %v920_v3, %v916_v63 }
 0x199   : > { %v928_v6 = vrot.slane %v921_v4, %v866_v8 }
 0x19b   : > { %v938_v9 = vsel %vm936_vm7, %v928_v6, %v937_v5 }
 0x19c   : > { %939 = vst [vmem:[%s344_s8] sm:$0xf] %v938_v9 }
 0x19d PF: > { %s21_s23 = sadd.s32 1, %s1367_s23   ;;  %s1710_s18 = smov %s1351_s19 }
 0x19e   : > { %p18_p4 = scmp.ge.s32.totalorder %s21_s23, 4   ;;  %s1711_s19 = smov %s1355_s20 }
 0x19f   : > { %s1712_s20 = smov %s1495_s30  ;;  %s1713_s21 = smov %s1363_s22 }
 0x1a0   : > { %s1714_s22 = smov %s1716_s6  ;;  %20 = sbr.rel (!%p18_p4) target bundleno = 11 (0xb), region = 98 }
 0x1a5   :  { %970 = vsyncpa [#allocation3], 1 }
 0x1a6   :  { %972 = vsyncpa [#allocation3 + $0x1], 1 }
 0x1a7   :  { %973 = vsyncpa [#allocation9], 1 }
 0x1a8   :  { %975 = vsyncpa [#allocation9 + $0x1], 1 }
 0x1a9   :  { %976 = vsyncpa [#allocation4], 1 }
 0x1aa   :  { %978 = vsyncpa [#allocation4 + $0x1], 1 }
 0x1ab   :  { %979 = vsyncpa [#allocation6], 1 }

</bundles_post_ra>
